<compile_context>
chip_gen: v6e
topology: v6e:2x2x1
jax: 0.10.0
libtpu: 0.0.40
codegen_flags: <defaults>
</compile_context>

<pallas_src>
import jax
import jax.numpy as jnp
from jax import lax
from jax.experimental import pallas as pl
from jax.experimental.pallas import tpu as pltpu


def _concat_conv3d_matmul_kernel(col_ref, w_ref, b_ref, o_ref):
    # col_ref: (Kc_pad, DHW)   im2col slab for this batch element
    # w_ref  : (Cout, Kc_pad)  packed conv weights (tap-major, cin-minor cols)
    # b_ref  : (Cout, 1)
    # o_ref  : (Cout, DHW)     lane-dense output (DHW multiple of 128)
    acc = jnp.dot(w_ref[...], col_ref[...], preferred_element_type=jnp.float32)
    o_ref[...] = (acc + b_ref[...]).astype(o_ref.dtype)


def concat_conv3d(x1, x2, weight, bias, *, kernel_size=5, stride=1, padding=2):
    """Equivalent of Concat.forward: conv3d(cat([x1, x2], dim=1)).

    x1, x2 : NCDHW float32
    weight : (Cout, Cin, K, K, K) with Cin == C1 + C2 (PyTorch Conv3d layout)
    bias   : (Cout,)
    """
    assert stride == 1, "module default stride=1 is the only supported stride"
    N, C1, D, H, W = x1.shape
    C2 = x2.shape[1]
    Cout, Cin, K, _, _ = weight.shape
    assert Cin == C1 + C2 and K == kernel_size
    p = padding

    DHW = D * H * W
    K3 = K * K * K
    Kc = K3 * Cin
    Kc_pad = ((Kc + 127) // 128) * 128      # 500 -> 512

    # ---- glue (plain JAX): concat channels, pad, build im2col, pack weights ----
    x_cat = jnp.concatenate([x1, x2], axis=1)            # (N, Cin, D, H, W)
    x_cl = jnp.transpose(x_cat, (0, 2, 3, 4, 1))         # (N, D, H, W, Cin)
    x_p = jnp.pad(x_cl, ((0, 0), (p, p), (p, p), (p, p), (0, 0)))

    # im2col slab, contraction rows ordered (tap, cin), columns = flattened DHW.
    taps = []
    for kd in range(K):
        for kh in range(K):
            for kw in range(K):
                taps.append(x_p[:, kd:kd + D, kh:kh + H, kw:kw + W, :])
    col = jnp.stack(taps, axis=1)                        # (N, K3, D, H, W, Cin)
    col = jnp.transpose(col, (0, 1, 5, 2, 3, 4)).reshape(N, Kc, DHW)
    col = jnp.pad(col, ((0, 0), (0, Kc_pad - Kc), (0, 0)))

    # (Cout, Cin, kd, kh, kw) -> (Cout, K3*Cin) with matching (tap, cin) order.
    w_packed = jnp.transpose(weight, (0, 2, 3, 4, 1)).reshape(Cout, Kc)
    w_packed = jnp.pad(w_packed, ((0, 0), (0, Kc_pad - Kc)))
    b2d = bias.reshape(Cout, 1)

    out_flat = pl.pallas_call(
        _concat_conv3d_matmul_kernel,
        out_shape=jax.ShapeDtypeStruct((N, Cout, DHW), x1.dtype),
        grid_spec=pltpu.PrefetchScalarGridSpec(
            num_scalar_prefetch=0,
            grid=(N,),
            in_specs=[
                pl.BlockSpec((None, Kc_pad, DHW), lambda n: (n, 0, 0)),
                pl.BlockSpec((Cout, Kc_pad), lambda n: (0, 0)),
                pl.BlockSpec((Cout, 1), lambda n: (0, 0)),
            ],
            out_specs=pl.BlockSpec((None, Cout, DHW), lambda n: (n, 0, 0)),
        ),
        compiler_params=pltpu.CompilerParams(
            dimension_semantics=("parallel",)),
    )(col, w_packed, b2d)

    return out_flat.reshape(N, Cout, D, H, W)            # already NCDHW order


if __name__ == "__main__":
    key = jax.random.PRNGKey(0)
    k1, k2, kw, kb = jax.random.split(key, 4)

    # small shapes: Concat(in_channel=4, out_channel=8) on 8^3 volumes
    N, C1, C2, D, H, W = 2, 2, 2, 8, 8, 8
    Cin, Cout, K = C1 + C2, 8, 5

    x1 = jax.random.normal(k1, (N, C1, D, H, W), jnp.float32)
    x2 = jax.random.normal(k2, (N, C2, D, H, W), jnp.float32)

    # deterministic synthetic parameters (shapes from nn.Conv3d(4, 8, 5, 1, 2))
    fan_in = Cin * K ** 3
    weight = jax.random.normal(kw, (Cout, Cin, K, K, K), jnp.float32) / jnp.sqrt(fan_in)
    bias = 0.1 * jax.random.normal(kb, (Cout,), jnp.float32)

    out = concat_conv3d(x1, x2, weight, bias, kernel_size=K, stride=1, padding=2)
    out = jax.block_until_ready(out)

    # pure-JAX reference (same semantics as torch: cat -> conv3d cross-correlation)
    x_cat = jnp.concatenate([x1, x2], axis=1)
    ref = lax.conv_general_dilated(
        x_cat, weight, window_strides=(1, 1, 1), padding=[(2, 2)] * 3,
        dimension_numbers=("NCDHW", "OIDHW", "NCDHW"),
    ) + bias.reshape(1, Cout, 1, 1, 1)

    assert out.shape == ref.shape == (N, Cout, D, H, W)
    max_err = float(jnp.max(jnp.abs(out - ref)))
    assert jnp.allclose(out, ref, rtol=1e-3, atol=1e-3), max_err
    print("KERNEL_OK")
</pallas_src>

<mosaic_0001>
module attributes {stable_mosaic.version = 11 : i64} {
  func.func @_concat_conv3d_matmul_kernel(%arg0: i32, %arg1: memref<1x512x512xf32, #tpu.memory_space<vmem>>, %arg2: memref<8x512xf32, #tpu.memory_space<vmem>>, %arg3: memref<8x1xf32, #tpu.memory_space<vmem>>, %arg4: memref<1x8x512xf32, #tpu.memory_space<vmem>>) attributes {dimension_semantics = [#tpu.dimension_semantics<parallel>], iteration_bounds = array<i64: 2>, scalar_prefetch = 0 : i64, scratch_operands = 0 : i64, tpu.core_type = #tpu.core_type<tc>, window_params = [{transform_indices = @transform_0, window_bounds = array<i64: 1, 512, 512>}, {pipeline_mode = #tpu.pipeline_mode<synchronous>, transform_indices = @transform_1, window_bounds = array<i64: 8, 512>}, {pipeline_mode = #tpu.pipeline_mode<synchronous>, transform_indices = @transform_2, window_bounds = array<i64: 8, 1>}, {transform_indices = @transform_3, window_bounds = array<i64: 1, 8, 512>}]} {
    %c0 = arith.constant 0 : index
    %c0_0 = arith.constant 0 : index
    %0 = vector.load %arg2[%c0, %c0_0] : memref<8x512xf32, #tpu.memory_space<vmem>>, vector<8x512xf32>
    %c0_1 = arith.constant 0 : index
    %c0_2 = arith.constant 0 : index
    %c0_3 = arith.constant 0 : index
    %1 = vector.load %arg1[%c0_1, %c0_2, %c0_3] : memref<1x512x512xf32, #tpu.memory_space<vmem>>, vector<1x512x512xf32>
    %2 = vector.shape_cast %1 : vector<1x512x512xf32> to vector<512x512xf32>
    %cst = arith.constant dense<0.000000e+00> : vector<8x512xf32>
    %3 = tpu.matmul %0, %2, %cst {dimension_numbers = #tpu.dot_dimension_numbers<[1], [0], [0], [1], [0, 0, 1, 1], [], []>} : vector<8x512xf32>, vector<512x512xf32>, vector<8x512xf32> -> vector<8x512xf32>
    %c0_4 = arith.constant 0 : index
    %c0_5 = arith.constant 0 : index
    %4 = vector.load %arg3[%c0_4, %c0_5] : memref<8x1xf32, #tpu.memory_space<vmem>>, vector<8x1xf32>
    %5 = vector.broadcast %4 : vector<8x1xf32> to vector<8x512xf32>
    %6 = arith.addf %3, %5 : vector<8x512xf32>
    %c0_6 = arith.constant 0 : index
    %c0_7 = arith.constant 0 : index
    %c0_8 = arith.constant 0 : index
    %7 = vector.load %arg4[%c0_6, %c0_7, %c0_8] : memref<1x8x512xf32, #tpu.memory_space<vmem>>, vector<1x8x512xf32>
    %8 = vector.shape_cast %7 : vector<1x8x512xf32> to vector<8x512xf32>
    %9 = vector.shape_cast %6 : vector<8x512xf32> to vector<1x8x512xf32>
    tpu.vector_store %arg4[%c0_6, %c0_7, %c0_8], %9 {strides = array<i32>} : memref<1x8x512xf32, #tpu.memory_space<vmem>>, vector<1x8x512xf32>,
    return
  }
  func.func @transform_0(%arg0: i32) -> (i32, i32, i32) {
    %c0_i32 = arith.constant 0 : i32
    %c0_i32_0 = arith.constant 0 : i32
    %c0_i32_1 = arith.constant 0 : i32
    return %arg0, %c0_i32, %c0_i32_0 : i32, i32, i32
  }
  func.func @transform_1(%arg0: i32) -> (i32, i32) {
    %c0_i32 = arith.constant 0 : i32
    %c0_i32_0 = arith.constant 0 : i32
    %c0_i32_1 = arith.constant 0 : i32
    return %c0_i32, %c0_i32_0 : i32, i32
  }
  func.func @transform_2(%arg0: i32) -> (i32, i32) {
    %c0_i32 = arith.constant 0 : i32
    %c0_i32_0 = arith.constant 0 : i32
    %c0_i32_1 = arith.constant 0 : i32
    return %c0_i32, %c0_i32_0 : i32, i32
  }
  func.func @transform_3(%arg0: i32) -> (i32, i32, i32) {
    %c0_i32 = arith.constant 0 : i32
    %c0_i32_0 = arith.constant 0 : i32
    %c0_i32_1 = arith.constant 0 : i32
    return %arg0, %c0_i32, %c0_i32_0 : i32, i32, i32
  }
}

</mosaic_0001>

<bundles_post_ra>
// kernel: tpu_custom_call.1
= control target key start
LH: loop header
LB: loop body
LE: loop exit
PB: predicated region body
PF: predicated region fallthrough
CT: control target
= control target key end

     0   :  { %8 = vsyncpa [#allocation3], 0  ;;  %s1525_s0 = inlined_call_operand.hbm [shape: f32[2,512,512], index: 0, kind: input, shape index: {}]   ;;  %s1526_s1 = inlined_call_operand.hbm [shape: f32[8,512], index: 1, kind: input, shape index: {}]   ;;  %s1527_s2 = inlined_call_operand.vmem [shape: f32[8,1], index: 2, kind: input, shape index: {}]   ;;  %s1528_s3 = inlined_call_operand.hbm [shape: f32[2,8,512], index: 3, kind: output, shape index: {}]  }
   0x1   :  { %10 = vsyncpa [#allocation3 + $0x1], 0 }
   0x2   :  { %11 = vsyncpa [#allocation6], 0 }
   0x3   :  { %12 = vsyncpa [#allocation4], 0 }
   0x4   :  { %14 = vsyncpa [#allocation4 + $0x1], 0  ;;  %s1080_s12 = smov 0   ;;  %s1082_s13 = smov 0  }
   0x5   :  { %s1084_s14 = smov 0   ;;  %s1086_s15 = smov 0  }
   0x6 LB: > { %s1101_s16 = sadd.s32 4294967295, %s1052_s15   ;;  %s851_s17 = sadd.s32 4294967294, %s1052_s15   ;;  %s1052_s15 = sphi %s1086_s15, %s1551_s15   ;;  %s1048_s14 = sphi %s1084_s14, %s1550_s14   ;;  %s1044_s13 = sphi %s1082_s13, %s1549_s13   ;;  %s1040_s12 = sphi %s1080_s12, %s1548_s12  }
   0x7   : > { %s1105_s18 = sadd.s32 1, %s1052_s15   ;;  %s27_s19 = sadd.s32 1, %s1048_s14 }
   0x8   : > { %s24_s20 = ssub.s32 %s1052_s15, %s1105_s18  ;;  %p34_p0 = scmp.ne.s32.totalorder %s1048_s14, %s1044_s13 }
   0x9   : > { %p25_p1 = scmp.eq.s32.totalorder %s24_s20, 0  ;;  %p35_p2 = scmp.eq.s32.totalorder %s1052_s15, 0 }
   0xa   : > { %p40_p3 = scmp.ne.s32.totalorder %s1044_s13, %s1040_s12  ;;  %p1529_p4 = scmp.eq.s32.totalorder %s1101_s16, 0 }
   0xb   : > { %s1117_s21 = scalar_select %p25_p1, %s1048_s14, %s27_s19  }
   0xc   : > { %p1119_p5 = por %p35_p2, %p34_p0  ;;  %p1125_p6 = por %p1529_p4, %p40_p3 }
   0xd   : > { %p106_p7 = scmp.eq.s32.totalorder %s1101_s16, 1  ;;  %p112_p8 = scmp.eq.s32.totalorder %s851_s17, 1 }
   0xe   : > { %s1534_s23 = scalar_select %p1125_p6, 1, 0 }
   0xf   : > { %p852_p9 = scmp.ge.s32.totalorder %s1052_s15, 1  ;;  %p119_p10 = scmp.lt.s32.totalorder %s1052_s15, 3 }
  0x10   : > { %p1132_p11 = por %p106_p7, %p34_p0  ;;  %p1136_p12 = por %p112_p8, %p40_p3 }
  0x11   : > { %p1140_p13 = pnand %p852_p9, %p119_p10  ;;  %s1054_s27 = smov [#allocation5]  }
  0x12   : > { %s1535_s24 = scalar_select %p1132_p11, 1, 0 }
  0x13   : > { %s1536_s25 = scalar_select %p1136_p12, 1, 0 }
  0x14   : > { %s1537_s26 = scalar_select %p1140_p13, 1, 0 }
  0x15   : > { %p877_p2 = pneg %p1140_p13  ;;  %s132_s28 = sshll.u32 %s1054_s27, 4  ;;  %s133_s28 = int_to_ptr.vmem [resolvable:$true] %s132_s28 }
  0x16   : > { %p890_p4 = scmp.lt.s32.totalorder %s1052_s15, 2  ;;  %p1538_p0 = scmp.eq.s32.totalorder %s1101_s16, 0 }
  0x17   : > { %s146_s30 = sand.u32 1, %s1048_s14   ;;  %s941_s6 = scalar_lea.vmem %s133_s28, 512 }
  0x18   : > { %p1150_p7 = pnand %p877_p2, %p1538_p0  ;;  %p1157_p3 = pnand %p890_p4, %p1119_p5 }
  0x19   : > { %s855_s5 = sshll.u32 %s146_s30, 11  ;;  %p942_p9 = scmp.ne.s32.totalorder %s133_s28, %s941_s6 }
  0x1a   : > { %p932_p8 = pneg %p1150_p7  ;;  %p949_p12 = scmp.lt.s32.totalorder %s133_s28, %s133_s28 }
  0x1b   : > { %p950_p11 = scmp.lt.s32.totalorder %s941_s6, %s941_s6 }
  0x1c   : > { %p944_p10 = pnand %p942_p9, %p932_p8 }
  0x1d   : > { %p951_p2 = por %p950_p11, %p949_p12 }
  0x1e   : > { %p945_p1 = pneg %p944_p10 }
  0x20   : > { %p952_p0 = pnand %p951_p2, %p945_p1 }
  0x22   : > { %955 = shalt.err (!%p952_p0)
}
  0x23   : > { %880 = dma.hbm_to_vmem [thread:$0]  (!%p1150_p7), %s1526_s1, 512, %s133_s28, [#allocation6]  }
  0x24   : > { %s867_s9 = sshll.u32 %s1052_s15, 15  ;;  %s150_s10 = scalar_lea.vmem [#allocation2], %s855_s5 }
  0x25   : > { %s157_s11 = sshll.u32 %s150_s10, 4  ;;  %s1172_s20 = scalar_lea.hbm %s1525_s0, %s867_s9  ;;  %s1174_s11 = int_to_ptr.vmem [resolvable:$true] %s157_s11 }
  0x26   : > { %s1176_s22 = scalar_lea.sflag [#allocation3], %s146_s30  ;;  %s956_s27 = scalar_lea.hbm %s1172_s20, 32768 }
  0x27   : > { %p957_p4 = scmp.ne.s32.totalorder %s1172_s20, %s956_s27  ;;  %p958_p5 = pneg %p1157_p3 }
  0x28   : > { %s961_s5 = scalar_lea.hbm %s1525_s0, 65536  ;;  %p962_p1 = scmp.lt.s32.totalorder %s1172_s20, %s1525_s0 }
  0x29   : > { %p959_p11 = pnand %p958_p5, %p957_p4  ;;  %p963_p7 = scmp.lt.s32.totalorder %s961_s5, %s956_s27 }
  0x2b   : > { %p960_p12 = pneg %p959_p11  ;;  %p964_p8 = por %p963_p7, %p962_p1 }
  0x2d   : > { %p965_p9 = pnand %p964_p8, %p960_p12 }
  0x2f   : > { %968 = shalt.err (!%p965_p9)
}
  0x30   : > { %s969_s30 = scalar_lea.vmem %s1174_s11, 32768  ;;  %s1055_s8 = smov [#allocation2]  }
  0x31   : > { %p970_p10 = scmp.ne.s32.totalorder %s1174_s11, %s969_s30  ;;  %s974_s9 = sshll.u32 %s1055_s8, 4  ;;  %s975_s9 = int_to_ptr.vmem [resolvable:$false] %s974_s9 }
  0x32   : > { %s976_s10 = scalar_lea.vmem %s975_s9, 65536  ;;  %p977_p4 = scmp.lt.s32.totalorder %s1174_s11, %s975_s9 }
  0x33   : > { %p972_p2 = pnand %p970_p10, %p958_p5  ;;  %p978_p11 = scmp.lt.s32.totalorder %s976_s10, %s969_s30 }
  0x35   : > { %p973_p0 = pneg %p972_p2  ;;  %p979_p6 = por %p978_p11, %p977_p4 }
  0x37   : > { %p980_p13 = pnand %p979_p6, %p973_p0 }
  0x39   : > { %983 = shalt.err (!%p980_p13)
}
  0x3a   : > { %s1056_s17 = smov 512   ;;  %s1057_s19 = smov 32  }
  0x3b   : > { %884 = dma.hbm_to_vmem [thread:$0]  (!%p1157_p3), %s1172_s20, 32768, %s1174_s11, %s1176_s22, %s1056_s17, %s1056_s17, %s1057_s19  }
  0x3c   : > { %p1541_p5 = scmp.ne.s32.totalorder %s1537_s26, 0 }
  0x3d   : > { %s1200_s27 = sand.u32 (!%p1541_p5), 1, %s1044_s13   ;;  %p1542_p6 = scmp.ne.s32.totalorder (!%p1541_p5), %s1534_s23, 0 }
  0x3e   : > { %169 = sbr.rel (%p1541_p5) target bundleno = 415 (0x19f), region = 32  ;;  %s859_s28 = sshll.u32 (!%p1541_p5), %s1200_s27, 11 }
  0x3f   : > { %s172_s29 = scalar_lea.sflag (!%p1541_p5), [#allocation3], %s1200_s27  ;;  %s1204_s5 = scalar_lea.vmem (!%p1541_p5), [#allocation2], %s859_s28 }
  0x43   : > { %1027 = dma.done.wait (%p1542_p6), %s172_s29, 32768  }
  0x44   : > { %1029 = vsyncadd (%p1542_p6), %s172_s29, 4294934528  ;;  %p1543_p13 = scmp.eq.s32.totalorder %s1101_s16, 0 }
  0x46   : > { %1031 = dma.done.wait (%p1543_p13), [#allocation6], 512   ;;  %p1544_p3 = pmov %p1543_p13 }
  0x47   : > { %v267_v0 = vld [vmem:[%s1204_s5 + $0x1e8] sm:$0xff]  ;;  %v266_v2 = vld [vmem:[%s1204_s5 + $0x1e0] sm:$0xff]  ;;  %s861_s4 = sshll.u32 %s1200_s27, 5  ;;  %s868_s20 = sshll.u32 %s1101_s16, 9 }
  0x48   : > { %1033 = vsyncadd (%p1544_p3), [#allocation6], 4294966784  ;;  %v395_v1 = vld [vmem:[%s1204_s5 + $0x5e8] sm:$0xff]  ;;  %468 = vmatprep.subr.mxu0 %v267_v0  ;;  %v394_v3 = vld [vmem:[%s1204_s5 + $0x5e0] sm:$0xff]  ;;  %s201_s11 = scalar_lea.vmem [#allocation7], %s861_s4  ;;  %s769_s30 = scalar_lea.hbm %s1528_s3, %s868_s20 }
  0x49   : > { %539 = vmatprep.subr.mxu1 %v395_v1  ;;  %v263_v4 = vld [vmem:[%s1204_s5 + $0x1c8] sm:$0xff]  ;;  %469 = vmatpush1.msra.mxu0 %v266_v2  ;;  %v262_v6 = vld [vmem:[%s1204_s5 + $0x1c0] sm:$0xff]  ;;  %s771_s22 = sshll.u32 %s201_s11, 4  ;;  %s757_s8 = scalar_lea.sflag [#allocation4], %s1200_s27  ;;  %s772_s22 = int_to_ptr.vmem [resolvable:$true] %s771_s22 }
  0x4a   : > { %v391_v5 = vld [vmem:[%s1204_s5 + $0x5c8] sm:$0xff]  ;;  %540 = vmatpush1.msra.mxu1 %v394_v3  ;;  %v390_v7 = vld [vmem:[%s1204_s5 + $0x5c0] sm:$0xff]  ;;  %470 = vmatprep.subr.mxu0 %v263_v4  ;;  %s984_s9 = scalar_lea.vmem %s772_s22, 512  ;;  %p1545_p1 = scmp.ne.s32.totalorder %s1535_s24, 0 }
  0x4b   : > { %v259_v8 = vld [vmem:[%s1204_s5 + $0x1a8] sm:$0xff]  ;;  %541 = vmatprep.subr.mxu1 %v391_v5  ;;  %v258_v10 = vld [vmem:[%s1204_s5 + $0x1a0] sm:$0xff]  ;;  %471 = vmatpush1.msra.mxu0 %v262_v6  ;;  %p985_p12 = scmp.ne.s32.totalorder %s772_s22, %s984_s9  ;;  %s1059_s10 = smov [#allocation7]  }
  0x4c   : > { %v387_v9 = vld [vmem:[%s1204_s5 + $0x5a8] sm:$0xff]  ;;  %v386_v11 = vld [vmem:[%s1204_s5 + $0x5a0] sm:$0xff]  ;;  %542 = vmatpush1.msra.mxu1 %v390_v7  ;;  %472 = vmatprep.subr.mxu0 %v259_v8  ;;  %s988_s16 = sshll.u32 %s1059_s10, 4  ;;  %s989_s16 = int_to_ptr.vmem [resolvable:$false] %s988_s16 }
  0x4d   : > { %v255_v12 = vld [vmem:[%s1204_s5 + $0x188] sm:$0xff]  ;;  %543 = vmatprep.subr.mxu1 %v387_v9  ;;  %v254_v14 = vld [vmem:[%s1204_s5 + $0x180] sm:$0xff]  ;;  %473 = vmatpush1.msra.mxu0 %v258_v10  ;;  %p986_p7 = pnand %p985_p12, %p1545_p1  ;;  %s990_s17 = scalar_lea.vmem %s989_s16, 1024 }
  0x4e   : > { %v383_v13 = vld [vmem:[%s1204_s5 + $0x588] sm:$0xff]  ;;  %v382_v15 = vld [vmem:[%s1204_s5 + $0x580] sm:$0xff]  ;;  %544 = vmatpush1.msra.mxu1 %v386_v11  ;;  %474 = vmatprep.subr.mxu0 %v255_v12  ;;  %p991_p9 = scmp.lt.s32.totalorder %s772_s22, %s989_s16  ;;  %p992_p10 = scmp.lt.s32.totalorder %s990_s17, %s984_s9 }
  0x4f   : > { %v251_v16 = vld [vmem:[%s1204_s5 + $0x168] sm:$0xff]  ;;  %545 = vmatprep.subr.mxu1 %v383_v13  ;;  %v250_v18 = vld [vmem:[%s1204_s5 + $0x160] sm:$0xff]  ;;  %475 = vmatpush1.msra.mxu0 %v254_v14  ;;  %p987_p8 = pneg %p986_p7 }
  0x50   : > { %v379_v17 = vld [vmem:[%s1204_s5 + $0x568] sm:$0xff]  ;;  %v378_v19 = vld [vmem:[%s1204_s5 + $0x560] sm:$0xff]  ;;  %546 = vmatpush1.msra.mxu1 %v382_v15  ;;  %476 = vmatprep.subr.mxu0 %v251_v16  ;;  %p993_p2 = por %p992_p10, %p991_p9 }
  0x51   : > { %v247_v20 = vld [vmem:[%s1204_s5 + $0x148] sm:$0xff]  ;;  %547 = vmatprep.subr.mxu1 %v379_v17  ;;  %v246_v22 = vld [vmem:[%s1204_s5 + $0x140] sm:$0xff]  ;;  %477 = vmatpush1.msra.mxu0 %v250_v18 }
  0x52   : > { %v375_v21 = vld [vmem:[%s1204_s5 + $0x548] sm:$0xff]  ;;  %v374_v23 = vld [vmem:[%s1204_s5 + $0x540] sm:$0xff]  ;;  %548 = vmatpush1.msra.mxu1 %v378_v19  ;;  %478 = vmatprep.subr.mxu0 %v247_v20  ;;  %p994_p0 = pnand %p993_p2, %p987_p8 }
  0x53   : > { %v243_v24 = vld [vmem:[%s1204_s5 + $0x128] sm:$0xff]  ;;  %549 = vmatprep.subr.mxu1 %v375_v21  ;;  %v242_v26 = vld [vmem:[%s1204_s5 + $0x120] sm:$0xff]  ;;  %479 = vmatpush1.msra.mxu0 %v246_v22 }
  0x54   : > { %v371_v25 = vld [vmem:[%s1204_s5 + $0x528] sm:$0xff]  ;;  %v370_v27 = vld [vmem:[%s1204_s5 + $0x520] sm:$0xff]  ;;  %550 = vmatpush1.msra.mxu1 %v374_v23  ;;  %480 = vmatprep.subr.mxu0 %v243_v24 }
  0x55   : > { %v239_v28 = vld [vmem:[%s1204_s5 + $0x108] sm:$0xff]  ;;  %551 = vmatprep.subr.mxu1 %v371_v25  ;;  %v238_v30 = vld [vmem:[%s1204_s5 + $0x100] sm:$0xff]  ;;  %481 = vmatpush1.msra.mxu0 %v242_v26 }
  0x56   : > { %v367_v29 = vld [vmem:[%s1204_s5 + $0x508] sm:$0xff]  ;;  %v366_v31 = vld [vmem:[%s1204_s5 + $0x500] sm:$0xff]  ;;  %552 = vmatpush1.msra.mxu1 %v370_v27  ;;  %482 = vmatprep.subr.mxu0 %v239_v28 }
  0x57   : > { %v235_v32 = vld [vmem:[%s1204_s5 + $0xe8] sm:$0xff]  ;;  %553 = vmatprep.subr.mxu1 %v367_v29  ;;  %v234_v34 = vld [vmem:[%s1204_s5 + $0xe0] sm:$0xff]  ;;  %483 = vmatpush1.msra.mxu0 %v238_v30 }
  0x58   : > { %v363_v33 = vld [vmem:[%s1204_s5 + $0x4e8] sm:$0xff]  ;;  %v362_v35 = vld [vmem:[%s1204_s5 + $0x4e0] sm:$0xff]  ;;  %554 = vmatpush1.msra.mxu1 %v366_v31  ;;  %484 = vmatprep.subr.mxu0 %v235_v32 }
  0x59   : > { %v231_v36 = vld [vmem:[%s1204_s5 + $0xc8] sm:$0xff]  ;;  %555 = vmatprep.subr.mxu1 %v363_v33  ;;  %v230_v38 = vld [vmem:[%s1204_s5 + $0xc0] sm:$0xff]  ;;  %485 = vmatpush1.msra.mxu0 %v234_v34 }
  0x5a   : > { %v359_v37 = vld [vmem:[%s1204_s5 + $0x4c8] sm:$0xff]  ;;  %v358_v39 = vld [vmem:[%s1204_s5 + $0x4c0] sm:$0xff]  ;;  %556 = vmatpush1.msra.mxu1 %v362_v35  ;;  %486 = vmatprep.subr.mxu0 %v231_v36 }
  0x5b   : > { %v227_v40 = vld [vmem:[%s1204_s5 + $0xa8] sm:$0xff]  ;;  %557 = vmatprep.subr.mxu1 %v359_v37  ;;  %v226_v42 = vld [vmem:[%s1204_s5 + $0xa0] sm:$0xff]  ;;  %487 = vmatpush1.msra.mxu0 %v230_v38 }
  0x5c   : > { %v355_v41 = vld [vmem:[%s1204_s5 + $0x4a8] sm:$0xff]  ;;  %v354_v43 = vld [vmem:[%s1204_s5 + $0x4a0] sm:$0xff]  ;;  %558 = vmatpush1.msra.mxu1 %v358_v39  ;;  %488 = vmatprep.subr.mxu0 %v227_v40 }
  0x5d   : > { %v223_v44 = vld [vmem:[%s1204_s5 + $0x88] sm:$0xff]  ;;  %559 = vmatprep.subr.mxu1 %v355_v41  ;;  %v222_v46 = vld [vmem:[%s1204_s5 + $0x80] sm:$0xff]  ;;  %489 = vmatpush1.msra.mxu0 %v226_v42 }
  0x5e   : > { %v351_v45 = vld [vmem:[%s1204_s5 + $0x488] sm:$0xff]  ;;  %v350_v47 = vld [vmem:[%s1204_s5 + $0x480] sm:$0xff]  ;;  %560 = vmatpush1.msra.mxu1 %v354_v43  ;;  %490 = vmatprep.subr.mxu0 %v223_v44 }
  0x5f   : > { %v219_v48 = vld [vmem:[%s1204_s5 + $0x68] sm:$0xff]  ;;  %561 = vmatprep.subr.mxu1 %v351_v45  ;;  %v218_v50 = vld [vmem:[%s1204_s5 + $0x60] sm:$0xff]  ;;  %491 = vmatpush1.msra.mxu0 %v222_v46 }
  0x60   : > { %v347_v49 = vld [vmem:[%s1204_s5 + $0x468] sm:$0xff]  ;;  %v346_v51 = vld [vmem:[%s1204_s5 + $0x460] sm:$0xff]  ;;  %562 = vmatpush1.msra.mxu1 %v350_v47  ;;  %492 = vmatprep.subr.mxu0 %v219_v48 }
  0x61   : > { %v215_v52 = vld [vmem:[%s1204_s5 + $0x48] sm:$0xff]  ;;  %563 = vmatprep.subr.mxu1 %v347_v49  ;;  %v214_v54 = vld [vmem:[%s1204_s5 + $0x40] sm:$0xff]  ;;  %493 = vmatpush1.msra.mxu0 %v218_v50 }
  0x62   : > { %v343_v53 = vld [vmem:[%s1204_s5 + $0x448] sm:$0xff]  ;;  %v342_v55 = vld [vmem:[%s1204_s5 + $0x440] sm:$0xff]  ;;  %564 = vmatpush1.msra.mxu1 %v346_v51  ;;  %494 = vmatprep.subr.mxu0 %v215_v52 }
  0x63   : > { %v211_v56 = vld [vmem:[%s1204_s5 + $0x28] sm:$0xff]  ;;  %565 = vmatprep.subr.mxu1 %v343_v53  ;;  %v210_v58 = vld [vmem:[%s1204_s5 + $0x20] sm:$0xff]  ;;  %495 = vmatpush1.msra.mxu0 %v214_v54 }
  0x64   : > { %v339_v57 = vld [vmem:[%s1204_s5 + $0x428] sm:$0xff]  ;;  %v338_v59 = vld [vmem:[%s1204_s5 + $0x420] sm:$0xff]  ;;  %566 = vmatpush1.msra.mxu1 %v342_v55  ;;  %496 = vmatprep.subr.mxu0 %v211_v56 }
  0x65   : > { %v207_v60 = vld [vmem:[%s1204_s5 + $0x8] sm:$0xff]  ;;  %567 = vmatprep.subr.mxu1 %v339_v57  ;;  %v206_v62 = vld [vmem:[%s1204_s5] sm:$0xff]  ;;  %497 = vmatpush1.msra.mxu0 %v210_v58 }
  0x66   : > { %v335_v61 = vld [vmem:[%s1204_s5 + $0x408] sm:$0xff]  ;;  %v334_v63 = vld [vmem:[%s1204_s5 + $0x400] sm:$0xff]  ;;  %568 = vmatpush1.msra.mxu1 %v338_v59  ;;  %498 = vmatprep.subr.mxu0 %v207_v60 }
  0x67   : > { %v331_v0 = vld [vmem:[%s1204_s5 + $0x3e8] sm:$0xff]  ;;  %569 = vmatprep.subr.mxu1 %v335_v61  ;;  %v330_v2 = vld [vmem:[%s1204_s5 + $0x3e0] sm:$0xff]  ;;  %499 = vmatpush1.msra.mxu0 %v206_v62 }
  0x68   : > { %v459_v1 = vld [vmem:[%s1204_s5 + $0x7e8] sm:$0xff]  ;;  %v458_v3 = vld [vmem:[%s1204_s5 + $0x7e0] sm:$0xff]  ;;  %570 = vmatpush1.msra.mxu1 %v334_v63  ;;  %500 = vmatprep.subr.mxu0 %v331_v0 }
  0x69   : > { %v327_v4 = vld [vmem:[%s1204_s5 + $0x3c8] sm:$0xff]  ;;  %571 = vmatprep.subr.mxu1 %v459_v1  ;;  %v326_v6 = vld [vmem:[%s1204_s5 + $0x3c0] sm:$0xff]  ;;  %501 = vmatpush2.msra.mxu0 %v330_v2  ;;  %v1346_v2 = vld [vmem:[#allocation5 + $0x18] sm:$0xff] }
  0x6a   : > { %v455_v5 = vld [vmem:[%s1204_s5 + $0x7c8] sm:$0xff]  ;;  %v454_v7 = vld [vmem:[%s1204_s5 + $0x7c0] sm:$0xff]  ;;  %572 = vmatpush2.msra.mxu1 %v458_v3  ;;  %502 = vmatprep.subr.mxu0 %v327_v4  ;;  %v269_v3 = vld [vmem:[%s1204_s5 + $0x1f8] sm:$0xff] }
  0x6b   : > { %v323_v8 = vld [vmem:[%s1204_s5 + $0x3a8] sm:$0xff]  ;;  %573 = vmatprep.subr.mxu1 %v455_v5  ;;  %v322_v10 = vld [vmem:[%s1204_s5 + $0x3a0] sm:$0xff]  ;;  %503 = vmatpush2.msra.mxu0 %v326_v6  ;;  %v397_v4 = vld [vmem:[%s1204_s5 + $0x5f8] sm:$0xff] }
  0x6c   : > { %v451_v9 = vld [vmem:[%s1204_s5 + $0x7a8] sm:$0xff]  ;;  %v450_v11 = vld [vmem:[%s1204_s5 + $0x7a0] sm:$0xff]  ;;  %574 = vmatpush2.msra.mxu1 %v454_v7  ;;  %504 = vmatprep.subr.mxu0 %v323_v8  ;;  %v1351_v5 = vld [vmem:[#allocation5 + $0x10] sm:$0xff] }
  0x6d   : > { %v319_v12 = vld [vmem:[%s1204_s5 + $0x388] sm:$0xff]  ;;  %575 = vmatprep.subr.mxu1 %v451_v9  ;;  %v318_v14 = vld [vmem:[%s1204_s5 + $0x380] sm:$0xff]  ;;  %505 = vmatpush2.msra.mxu0 %v322_v10  ;;  %v268_v6 = vld [vmem:[%s1204_s5 + $0x1f0] sm:$0xff] }
  0x6e   : > { %v447_v13 = vld [vmem:[%s1204_s5 + $0x788] sm:$0xff]  ;;  %v446_v15 = vld [vmem:[%s1204_s5 + $0x780] sm:$0xff]  ;;  %576 = vmatpush2.msra.mxu1 %v450_v11  ;;  %506 = vmatprep.subr.mxu0 %v319_v12  ;;  %v396_v7 = vld [vmem:[%s1204_s5 + $0x5f0] sm:$0xff] }
  0x6f   : > { %v315_v16 = vld [vmem:[%s1204_s5 + $0x368] sm:$0xff]  ;;  %577 = vmatprep.subr.mxu1 %v447_v13  ;;  %v314_v18 = vld [vmem:[%s1204_s5 + $0x360] sm:$0xff]  ;;  %507 = vmatpush2.msra.mxu0 %v318_v14  ;;  %v265_v8 = vld [vmem:[%s1204_s5 + $0x1d8] sm:$0xff] }
  0x70   : > { %v443_v17 = vld [vmem:[%s1204_s5 + $0x768] sm:$0xff]  ;;  %v442_v19 = vld [vmem:[%s1204_s5 + $0x760] sm:$0xff]  ;;  %578 = vmatpush2.msra.mxu1 %v446_v15  ;;  %508 = vmatprep.subr.mxu0 %v315_v16  ;;  %v393_v9 = vld [vmem:[%s1204_s5 + $0x5d8] sm:$0xff] }
  0x71   : > { %v311_v20 = vld [vmem:[%s1204_s5 + $0x348] sm:$0xff]  ;;  %579 = vmatprep.subr.mxu1 %v443_v17  ;;  %v310_v22 = vld [vmem:[%s1204_s5 + $0x340] sm:$0xff]  ;;  %509 = vmatpush2.msra.mxu0 %v314_v18  ;;  %v264_v10 = vld [vmem:[%s1204_s5 + $0x1d0] sm:$0xff] }
  0x72   : > { %v439_v21 = vld [vmem:[%s1204_s5 + $0x748] sm:$0xff]  ;;  %v438_v23 = vld [vmem:[%s1204_s5 + $0x740] sm:$0xff]  ;;  %580 = vmatpush2.msra.mxu1 %v442_v19  ;;  %510 = vmatprep.subr.mxu0 %v311_v20  ;;  %v392_v11 = vld [vmem:[%s1204_s5 + $0x5d0] sm:$0xff] }
  0x73   : > { %v307_v24 = vld [vmem:[%s1204_s5 + $0x328] sm:$0xff]  ;;  %581 = vmatprep.subr.mxu1 %v439_v21  ;;  %v306_v26 = vld [vmem:[%s1204_s5 + $0x320] sm:$0xff]  ;;  %511 = vmatpush2.msra.mxu0 %v310_v22  ;;  %v261_v12 = vld [vmem:[%s1204_s5 + $0x1b8] sm:$0xff] }
  0x74   : > { %v435_v25 = vld [vmem:[%s1204_s5 + $0x728] sm:$0xff]  ;;  %v434_v27 = vld [vmem:[%s1204_s5 + $0x720] sm:$0xff]  ;;  %582 = vmatpush2.msra.mxu1 %v438_v23  ;;  %512 = vmatprep.subr.mxu0 %v307_v24  ;;  %v389_v13 = vld [vmem:[%s1204_s5 + $0x5b8] sm:$0xff] }
  0x75   : > { %v303_v28 = vld [vmem:[%s1204_s5 + $0x308] sm:$0xff]  ;;  %583 = vmatprep.subr.mxu1 %v435_v25  ;;  %v302_v30 = vld [vmem:[%s1204_s5 + $0x300] sm:$0xff]  ;;  %513 = vmatpush2.msra.mxu0 %v306_v26  ;;  %v260_v14 = vld [vmem:[%s1204_s5 + $0x1b0] sm:$0xff] }
  0x76   : > { %v431_v29 = vld [vmem:[%s1204_s5 + $0x708] sm:$0xff]  ;;  %v430_v31 = vld [vmem:[%s1204_s5 + $0x700] sm:$0xff]  ;;  %584 = vmatpush2.msra.mxu1 %v434_v27  ;;  %514 = vmatprep.subr.mxu0 %v303_v28  ;;  %v388_v15 = vld [vmem:[%s1204_s5 + $0x5b0] sm:$0xff] }
  0x77   : > { %v299_v32 = vld [vmem:[%s1204_s5 + $0x2e8] sm:$0xff]  ;;  %585 = vmatprep.subr.mxu1 %v431_v29  ;;  %v298_v34 = vld [vmem:[%s1204_s5 + $0x2e0] sm:$0xff]  ;;  %515 = vmatpush2.msra.mxu0 %v302_v30  ;;  %v257_v16 = vld [vmem:[%s1204_s5 + $0x198] sm:$0xff] }
  0x78   : > { %v427_v33 = vld [vmem:[%s1204_s5 + $0x6e8] sm:$0xff]  ;;  %v426_v35 = vld [vmem:[%s1204_s5 + $0x6e0] sm:$0xff]  ;;  %586 = vmatpush2.msra.mxu1 %v430_v31  ;;  %516 = vmatprep.subr.mxu0 %v299_v32  ;;  %v385_v17 = vld [vmem:[%s1204_s5 + $0x598] sm:$0xff] }
  0x79   : > { %v295_v36 = vld [vmem:[%s1204_s5 + $0x2c8] sm:$0xff]  ;;  %587 = vmatprep.subr.mxu1 %v427_v33  ;;  %v294_v38 = vld [vmem:[%s1204_s5 + $0x2c0] sm:$0xff]  ;;  %517 = vmatpush2.msra.mxu0 %v298_v34  ;;  %v256_v18 = vld [vmem:[%s1204_s5 + $0x190] sm:$0xff] }
  0x7a   : > { %v423_v37 = vld [vmem:[%s1204_s5 + $0x6c8] sm:$0xff]  ;;  %v422_v39 = vld [vmem:[%s1204_s5 + $0x6c0] sm:$0xff]  ;;  %588 = vmatpush2.msra.mxu1 %v426_v35  ;;  %518 = vmatprep.subr.mxu0 %v295_v36  ;;  %v384_v19 = vld [vmem:[%s1204_s5 + $0x590] sm:$0xff] }
  0x7b   : > { %v291_v40 = vld [vmem:[%s1204_s5 + $0x2a8] sm:$0xff]  ;;  %589 = vmatprep.subr.mxu1 %v423_v37  ;;  %v290_v42 = vld [vmem:[%s1204_s5 + $0x2a0] sm:$0xff]  ;;  %519 = vmatpush2.msra.mxu0 %v294_v38  ;;  %v253_v20 = vld [vmem:[%s1204_s5 + $0x178] sm:$0xff] }
  0x7c   : > { %v419_v41 = vld [vmem:[%s1204_s5 + $0x6a8] sm:$0xff]  ;;  %v418_v43 = vld [vmem:[%s1204_s5 + $0x6a0] sm:$0xff]  ;;  %590 = vmatpush2.msra.mxu1 %v422_v39  ;;  %520 = vmatprep.subr.mxu0 %v291_v40  ;;  %v381_v21 = vld [vmem:[%s1204_s5 + $0x578] sm:$0xff] }
  0x7d   : > { %v287_v44 = vld [vmem:[%s1204_s5 + $0x288] sm:$0xff]  ;;  %591 = vmatprep.subr.mxu1 %v419_v41  ;;  %v286_v46 = vld [vmem:[%s1204_s5 + $0x280] sm:$0xff]  ;;  %521 = vmatpush2.msra.mxu0 %v290_v42  ;;  %v252_v22 = vld [vmem:[%s1204_s5 + $0x170] sm:$0xff] }
  0x7e   : > { %v415_v45 = vld [vmem:[%s1204_s5 + $0x688] sm:$0xff]  ;;  %v414_v47 = vld [vmem:[%s1204_s5 + $0x680] sm:$0xff]  ;;  %592 = vmatpush2.msra.mxu1 %v418_v43  ;;  %522 = vmatprep.subr.mxu0 %v287_v44  ;;  %v380_v23 = vld [vmem:[%s1204_s5 + $0x570] sm:$0xff] }
  0x7f   : > { %v283_v48 = vld [vmem:[%s1204_s5 + $0x268] sm:$0xff]  ;;  %593 = vmatprep.subr.mxu1 %v415_v45  ;;  %v282_v50 = vld [vmem:[%s1204_s5 + $0x260] sm:$0xff]  ;;  %523 = vmatpush2.msra.mxu0 %v286_v46  ;;  %v249_v24 = vld [vmem:[%s1204_s5 + $0x158] sm:$0xff] }
  0x80   : > { %v411_v49 = vld [vmem:[%s1204_s5 + $0x668] sm:$0xff]  ;;  %v410_v51 = vld [vmem:[%s1204_s5 + $0x660] sm:$0xff]  ;;  %594 = vmatpush2.msra.mxu1 %v414_v47  ;;  %524 = vmatprep.subr.mxu0 %v283_v48  ;;  %v377_v25 = vld [vmem:[%s1204_s5 + $0x558] sm:$0xff] }
  0x81   : > { %v279_v52 = vld [vmem:[%s1204_s5 + $0x248] sm:$0xff]  ;;  %595 = vmatprep.subr.mxu1 %v411_v49  ;;  %v278_v54 = vld [vmem:[%s1204_s5 + $0x240] sm:$0xff]  ;;  %525 = vmatpush2.msra.mxu0 %v282_v50  ;;  %v248_v26 = vld [vmem:[%s1204_s5 + $0x150] sm:$0xff] }
  0x82   : > { %v407_v53 = vld [vmem:[%s1204_s5 + $0x648] sm:$0xff]  ;;  %v406_v55 = vld [vmem:[%s1204_s5 + $0x640] sm:$0xff]  ;;  %596 = vmatpush2.msra.mxu1 %v410_v51  ;;  %526 = vmatprep.subr.mxu0 %v279_v52  ;;  %v376_v27 = vld [vmem:[%s1204_s5 + $0x550] sm:$0xff] }
  0x83   : > { %v275_v56 = vld [vmem:[%s1204_s5 + $0x228] sm:$0xff]  ;;  %597 = vmatprep.subr.mxu1 %v407_v53  ;;  %v274_v58 = vld [vmem:[%s1204_s5 + $0x220] sm:$0xff]  ;;  %527 = vmatpush2.msra.mxu0 %v278_v54  ;;  %v245_v28 = vld [vmem:[%s1204_s5 + $0x138] sm:$0xff] }
  0x84   : > { %v403_v57 = vld [vmem:[%s1204_s5 + $0x628] sm:$0xff]  ;;  %v402_v59 = vld [vmem:[%s1204_s5 + $0x620] sm:$0xff]  ;;  %598 = vmatpush2.msra.mxu1 %v406_v55  ;;  %528 = vmatprep.subr.mxu0 %v275_v56  ;;  %v373_v29 = vld [vmem:[%s1204_s5 + $0x538] sm:$0xff] }
  0x85   : > { %v271_v60 = vld [vmem:[%s1204_s5 + $0x208] sm:$0xff]  ;;  %599 = vmatprep.subr.mxu1 %v403_v57  ;;  %v270_v62 = vld [vmem:[%s1204_s5 + $0x200] sm:$0xff]  ;;  %529 = vmatpush2.msra.mxu0 %v274_v58  ;;  %v244_v30 = vld [vmem:[%s1204_s5 + $0x130] sm:$0xff] }
  0x86   : > { %v399_v61 = vld [vmem:[%s1204_s5 + $0x608] sm:$0xff]  ;;  %600 = vmatpush2.msra.mxu1 %v402_v59  ;;  %v398_v0 = vld [vmem:[%s1204_s5 + $0x600] sm:$0xff]  ;;  %530 = vmatprep.subr.mxu0 %v271_v60  ;;  %v372_v31 = vld [vmem:[%s1204_s5 + $0x530] sm:$0xff] }
  0x87   : > { %v1341_v63 = vld [vmem:[#allocation5 + $0x8] sm:$0xff]  ;;  %v1344_v1 = vld [vmem:[#allocation5] sm:$0xff]  ;;  %601 = vmatprep.subr.mxu1 %v399_v61  ;;  %531 = vmatpush2.msra.mxu0 %v270_v62  ;;  %v241_v32 = vld [vmem:[%s1204_s5 + $0x118] sm:$0xff] }
  0x88   : > { %532 = vmatprep.mubr.f32.mxu0 %v1341_v63  ;;  %602 = vmatpush2.msra.mxu1 %v398_v0  ;;  %v369_v33 = vld [vmem:[%s1204_s5 + $0x518] sm:$0xff]  ;;  %v240_v34 = vld [vmem:[%s1204_s5 + $0x110] sm:$0xff] }
  0x89   : > { %533 = vmatmul.mubr.f32.vlgmr.msra.gmra.mxu0 %v1344_v1  ;;  %603 = vmatprep.mubr.f32.mxu1 %v1346_v2  ;;  %v368_v35 = vld [vmem:[%s1204_s5 + $0x510] sm:$0xff]  ;;  %v237_v36 = vld [vmem:[%s1204_s5 + $0xf8] sm:$0xff] }
  0x8a   : > { %610 = vmatprep.subr.mxu0 %v269_v3  ;;  %681 = vmatprep.subr.mxu1 %v397_v4  ;;  %v365_v37 = vld [vmem:[%s1204_s5 + $0x4f8] sm:$0xff]  ;;  %v236_v38 = vld [vmem:[%s1204_s5 + $0xf0] sm:$0xff] }
  0x8b   : > { %604 = vmatmul.mubr.f32.vlgmr.msra.gmra.mxu1 %v1351_v5  ;;  %611 = vmatpush1.msra.mxu0 %v268_v6  ;;  %v364_v39 = vld [vmem:[%s1204_s5 + $0x4f0] sm:$0xff]  ;;  %v233_v40 = vld [vmem:[%s1204_s5 + $0xd8] sm:$0xff] }
  0x8c   : > { %682 = vmatpush1.msra.mxu1 %v396_v7  ;;  %612 = vmatprep.subr.mxu0 %v265_v8  ;;  %v361_v41 = vld [vmem:[%s1204_s5 + $0x4d8] sm:$0xff]  ;;  %v232_v42 = vld [vmem:[%s1204_s5 + $0xd0] sm:$0xff] }
  0x8d   : > { %683 = vmatprep.subr.mxu1 %v393_v9  ;;  %613 = vmatpush1.msra.mxu0 %v264_v10  ;;  %v360_v43 = vld [vmem:[%s1204_s5 + $0x4d0] sm:$0xff]  ;;  %v229_v44 = vld [vmem:[%s1204_s5 + $0xb8] sm:$0xff] }
  0x8e   : > { %684 = vmatpush1.msra.mxu1 %v392_v11  ;;  %614 = vmatprep.subr.mxu0 %v261_v12  ;;  %v357_v45 = vld [vmem:[%s1204_s5 + $0x4b8] sm:$0xff]  ;;  %v228_v46 = vld [vmem:[%s1204_s5 + $0xb0] sm:$0xff] }
  0x8f   : > { %685 = vmatprep.subr.mxu1 %v389_v13  ;;  %615 = vmatpush1.msra.mxu0 %v260_v14  ;;  %v356_v47 = vld [vmem:[%s1204_s5 + $0x4b0] sm:$0xff]  ;;  %v225_v48 = vld [vmem:[%s1204_s5 + $0x98] sm:$0xff] }
  0x90   : > { %686 = vmatpush1.msra.mxu1 %v388_v15  ;;  %616 = vmatprep.subr.mxu0 %v257_v16  ;;  %v353_v49 = vld [vmem:[%s1204_s5 + $0x498] sm:$0xff]  ;;  %v224_v50 = vld [vmem:[%s1204_s5 + $0x90] sm:$0xff] }
  0x91   : > { %687 = vmatprep.subr.mxu1 %v385_v17  ;;  %617 = vmatpush1.msra.mxu0 %v256_v18  ;;  %v352_v51 = vld [vmem:[%s1204_s5 + $0x490] sm:$0xff]  ;;  %v221_v52 = vld [vmem:[%s1204_s5 + $0x78] sm:$0xff] }
  0x92   : > { %688 = vmatpush1.msra.mxu1 %v384_v19  ;;  %618 = vmatprep.subr.mxu0 %v253_v20  ;;  %v349_v53 = vld [vmem:[%s1204_s5 + $0x478] sm:$0xff]  ;;  %v220_v54 = vld [vmem:[%s1204_s5 + $0x70] sm:$0xff] }
  0x93   : > { %689 = vmatprep.subr.mxu1 %v381_v21  ;;  %619 = vmatpush1.msra.mxu0 %v252_v22  ;;  %v348_v55 = vld [vmem:[%s1204_s5 + $0x470] sm:$0xff]  ;;  %v217_v56 = vld [vmem:[%s1204_s5 + $0x58] sm:$0xff] }
  0x94   : > { %690 = vmatpush1.msra.mxu1 %v380_v23  ;;  %620 = vmatprep.subr.mxu0 %v249_v24  ;;  %v345_v57 = vld [vmem:[%s1204_s5 + $0x458] sm:$0xff]  ;;  %v216_v58 = vld [vmem:[%s1204_s5 + $0x50] sm:$0xff] }
  0x95   : > { %691 = vmatprep.subr.mxu1 %v377_v25  ;;  %621 = vmatpush1.msra.mxu0 %v248_v26  ;;  %v344_v59 = vld [vmem:[%s1204_s5 + $0x450] sm:$0xff]  ;;  %v213_v60 = vld [vmem:[%s1204_s5 + $0x38] sm:$0xff] }
  0x96   : > { %692 = vmatpush1.msra.mxu1 %v376_v27  ;;  %622 = vmatprep.subr.mxu0 %v245_v28  ;;  %v341_v61 = vld [vmem:[%s1204_s5 + $0x438] sm:$0xff]  ;;  %v212_v62 = vld [vmem:[%s1204_s5 + $0x30] sm:$0xff] }
  0x97   : > { %693 = vmatprep.subr.mxu1 %v373_v29  ;;  %623 = vmatpush1.msra.mxu0 %v244_v30  ;;  %v340_v0 = vld [vmem:[%s1204_s5 + $0x430] sm:$0xff]  ;;  %v209_v3 = vld [vmem:[%s1204_s5 + $0x18] sm:$0xff] }
  0x98   : > { %694 = vmatpush1.msra.mxu1 %v372_v31  ;;  %624 = vmatprep.subr.mxu0 %v241_v32  ;;  %v337_v4 = vld [vmem:[%s1204_s5 + $0x418] sm:$0xff]  ;;  %v208_v6 = vld [vmem:[%s1204_s5 + $0x10] sm:$0xff] }
  0x99   : > { %695 = vmatprep.subr.mxu1 %v369_v33  ;;  %625 = vmatpush1.msra.mxu0 %v240_v34  ;;  %v336_v7 = vld [vmem:[%s1204_s5 + $0x410] sm:$0xff]  ;;  %v333_v8 = vld [vmem:[%s1204_s5 + $0x3f8] sm:$0xff] }
  0x9a   : > { %696 = vmatpush1.msra.mxu1 %v368_v35  ;;  %626 = vmatprep.subr.mxu0 %v237_v36  ;;  %v461_v9 = vld [vmem:[%s1204_s5 + $0x7f8] sm:$0xff]  ;;  %v332_v10 = vld [vmem:[%s1204_s5 + $0x3f0] sm:$0xff] }
  0x9b   : > { %697 = vmatprep.subr.mxu1 %v365_v37  ;;  %627 = vmatpush1.msra.mxu0 %v236_v38  ;;  %v460_v11 = vld [vmem:[%s1204_s5 + $0x7f0] sm:$0xff]  ;;  %v329_v12 = vld [vmem:[%s1204_s5 + $0x3d8] sm:$0xff] }
  0x9c   : > { %698 = vmatpush1.msra.mxu1 %v364_v39  ;;  %628 = vmatprep.subr.mxu0 %v233_v40  ;;  %v457_v13 = vld [vmem:[%s1204_s5 + $0x7d8] sm:$0xff]  ;;  %v328_v14 = vld [vmem:[%s1204_s5 + $0x3d0] sm:$0xff] }
  0x9d   : > { %699 = vmatprep.subr.mxu1 %v361_v41  ;;  %629 = vmatpush1.msra.mxu0 %v232_v42  ;;  %v456_v15 = vld [vmem:[%s1204_s5 + $0x7d0] sm:$0xff]  ;;  %v325_v16 = vld [vmem:[%s1204_s5 + $0x3b8] sm:$0xff] }
  0x9e   : > { %700 = vmatpush1.msra.mxu1 %v360_v43  ;;  %630 = vmatprep.subr.mxu0 %v229_v44  ;;  %v453_v17 = vld [vmem:[%s1204_s5 + $0x7b8] sm:$0xff]  ;;  %v324_v18 = vld [vmem:[%s1204_s5 + $0x3b0] sm:$0xff] }
  0x9f   : > { %701 = vmatprep.subr.mxu1 %v357_v45  ;;  %631 = vmatpush1.msra.mxu0 %v228_v46  ;;  %v452_v19 = vld [vmem:[%s1204_s5 + $0x7b0] sm:$0xff]  ;;  %v321_v20 = vld [vmem:[%s1204_s5 + $0x398] sm:$0xff] }
  0xa0   : > { %702 = vmatpush1.msra.mxu1 %v356_v47  ;;  %632 = vmatprep.subr.mxu0 %v225_v48  ;;  %v449_v21 = vld [vmem:[%s1204_s5 + $0x798] sm:$0xff]  ;;  %v320_v22 = vld [vmem:[%s1204_s5 + $0x390] sm:$0xff] }
  0xa1   : > { %703 = vmatprep.subr.mxu1 %v353_v49  ;;  %633 = vmatpush1.msra.mxu0 %v224_v50  ;;  %v448_v23 = vld [vmem:[%s1204_s5 + $0x790] sm:$0xff]  ;;  %v317_v24 = vld [vmem:[%s1204_s5 + $0x378] sm:$0xff] }
  0xa2   : > { %704 = vmatpush1.msra.mxu1 %v352_v51  ;;  %634 = vmatprep.subr.mxu0 %v221_v52  ;;  %v445_v25 = vld [vmem:[%s1204_s5 + $0x778] sm:$0xff]  ;;  %v316_v26 = vld [vmem:[%s1204_s5 + $0x370] sm:$0xff] }
  0xa3   : > { %705 = vmatprep.subr.mxu1 %v349_v53  ;;  %635 = vmatpush1.msra.mxu0 %v220_v54  ;;  %v444_v27 = vld [vmem:[%s1204_s5 + $0x770] sm:$0xff]  ;;  %v313_v28 = vld [vmem:[%s1204_s5 + $0x358] sm:$0xff] }
  0xa4   : > { %706 = vmatpush1.msra.mxu1 %v348_v55  ;;  %636 = vmatprep.subr.mxu0 %v217_v56  ;;  %v441_v29 = vld [vmem:[%s1204_s5 + $0x758] sm:$0xff]  ;;  %v312_v30 = vld [vmem:[%s1204_s5 + $0x350] sm:$0xff] }
  0xa5   : > { %707 = vmatprep.subr.mxu1 %v345_v57  ;;  %637 = vmatpush1.msra.mxu0 %v216_v58  ;;  %v440_v31 = vld [vmem:[%s1204_s5 + $0x750] sm:$0xff]  ;;  %v309_v32 = vld [vmem:[%s1204_s5 + $0x338] sm:$0xff] }
  0xa6   : > { %708 = vmatpush1.msra.mxu1 %v344_v59  ;;  %638 = vmatprep.subr.mxu0 %v213_v60  ;;  %v437_v33 = vld [vmem:[%s1204_s5 + $0x738] sm:$0xff]  ;;  %v308_v34 = vld [vmem:[%s1204_s5 + $0x330] sm:$0xff] }
  0xa7   : > { %709 = vmatprep.subr.mxu1 %v341_v61  ;;  %639 = vmatpush1.msra.mxu0 %v212_v62  ;;  %v436_v35 = vld [vmem:[%s1204_s5 + $0x730] sm:$0xff]  ;;  %v305_v36 = vld [vmem:[%s1204_s5 + $0x318] sm:$0xff] }
  0xa8   : > { %710 = vmatpush1.msra.mxu1 %v340_v0  ;;  %640 = vmatprep.subr.mxu0 %v209_v3  ;;  %v433_v37 = vld [vmem:[%s1204_s5 + $0x718] sm:$0xff]  ;;  %v304_v38 = vld [vmem:[%s1204_s5 + $0x310] sm:$0xff] }
  0xa9   : > { %711 = vmatprep.subr.mxu1 %v337_v4  ;;  %641 = vmatpush1.msra.mxu0 %v208_v6  ;;  %v432_v39 = vld [vmem:[%s1204_s5 + $0x710] sm:$0xff]  ;;  %v301_v40 = vld [vmem:[%s1204_s5 + $0x2f8] sm:$0xff] }
  0xaa   : > { %712 = vmatpush1.msra.mxu1 %v336_v7  ;;  %642 = vmatprep.subr.mxu0 %v333_v8  ;;  %v429_v41 = vld [vmem:[%s1204_s5 + $0x6f8] sm:$0xff]  ;;  %v300_v42 = vld [vmem:[%s1204_s5 + $0x2f0] sm:$0xff] }
  0xab   : > { %713 = vmatprep.subr.mxu1 %v461_v9  ;;  %643 = vmatpush2.msra.mxu0 %v332_v10  ;;  %v428_v43 = vld [vmem:[%s1204_s5 + $0x6f0] sm:$0xff]  ;;  %v297_v44 = vld [vmem:[%s1204_s5 + $0x2d8] sm:$0xff] }
  0xac   : > { %714 = vmatpush2.msra.mxu1 %v460_v11  ;;  %644 = vmatprep.subr.mxu0 %v329_v12  ;;  %v425_v45 = vld [vmem:[%s1204_s5 + $0x6d8] sm:$0xff]  ;;  %v296_v46 = vld [vmem:[%s1204_s5 + $0x2d0] sm:$0xff]  ;;  %v462_v12 = vld [vmem:[%s1527_s2] sm:$0xff] }
  0xad   : > { %715 = vmatprep.subr.mxu1 %v457_v13  ;;  %645 = vmatpush2.msra.mxu0 %v328_v14  ;;  %v424_v47 = vld [vmem:[%s1204_s5 + $0x6d0] sm:$0xff]  ;;  %v293_v48 = vld [vmem:[%s1204_s5 + $0x2b8] sm:$0xff]  ;;  %v1058_v13 = vmov 0  }
  0xae   : > { %716 = vmatpush2.msra.mxu1 %v456_v15  ;;  %646 = vmatprep.subr.mxu0 %v325_v16  ;;  %v421_v49 = vld [vmem:[%s1204_s5 + $0x6b8] sm:$0xff]  ;;  %v292_v50 = vld [vmem:[%s1204_s5 + $0x2b0] sm:$0xff] }
  0xaf   : > { %717 = vmatprep.subr.mxu1 %v453_v17  ;;  %647 = vmatpush2.msra.mxu0 %v324_v18  ;;  %v420_v51 = vld [vmem:[%s1204_s5 + $0x6b0] sm:$0xff]  ;;  %v289_v52 = vld [vmem:[%s1204_s5 + $0x298] sm:$0xff] }
  0xb0   : > { %718 = vmatpush2.msra.mxu1 %v452_v19  ;;  %648 = vmatprep.subr.mxu0 %v321_v20  ;;  %v417_v53 = vld [vmem:[%s1204_s5 + $0x698] sm:$0xff]  ;;  %v288_v54 = vld [vmem:[%s1204_s5 + $0x290] sm:$0xff] }
  0xb1   : > { %719 = vmatprep.subr.mxu1 %v449_v21  ;;  %649 = vmatpush2.msra.mxu0 %v320_v22  ;;  %v416_v55 = vld [vmem:[%s1204_s5 + $0x690] sm:$0xff]  ;;  %v285_v56 = vld [vmem:[%s1204_s5 + $0x278] sm:$0xff] }
  0xb2   : > { %720 = vmatpush2.msra.mxu1 %v448_v23  ;;  %650 = vmatprep.subr.mxu0 %v317_v24  ;;  %v413_v57 = vld [vmem:[%s1204_s5 + $0x678] sm:$0xff]  ;;  %v284_v58 = vld [vmem:[%s1204_s5 + $0x270] sm:$0xff] }
  0xb3   : > { %721 = vmatprep.subr.mxu1 %v445_v25  ;;  %651 = vmatpush2.msra.mxu0 %v316_v26  ;;  %v412_v59 = vld [vmem:[%s1204_s5 + $0x670] sm:$0xff]  ;;  %v281_v60 = vld [vmem:[%s1204_s5 + $0x258] sm:$0xff] }
  0xb4   : > { %722 = vmatpush2.msra.mxu1 %v444_v27  ;;  %652 = vmatprep.subr.mxu0 %v313_v28  ;;  %v409_v61 = vld [vmem:[%s1204_s5 + $0x658] sm:$0xff]  ;;  %v280_v62 = vld [vmem:[%s1204_s5 + $0x250] sm:$0xff] }
  0xb5   : > { %723 = vmatprep.subr.mxu1 %v441_v29  ;;  %653 = vmatpush2.msra.mxu0 %v312_v30  ;;  %v408_v0 = vld [vmem:[%s1204_s5 + $0x650] sm:$0xff]  ;;  %v277_v3 = vld [vmem:[%s1204_s5 + $0x238] sm:$0xff] }
  0xb6   : > { %724 = vmatpush2.msra.mxu1 %v440_v31  ;;  %654 = vmatprep.subr.mxu0 %v309_v32  ;;  %v405_v4 = vld [vmem:[%s1204_s5 + $0x638] sm:$0xff]  ;;  %v276_v6 = vld [vmem:[%s1204_s5 + $0x230] sm:$0xff] }
  0xb7   : > { %725 = vmatprep.subr.mxu1 %v437_v33  ;;  %655 = vmatpush2.msra.mxu0 %v308_v34  ;;  %v404_v7 = vld [vmem:[%s1204_s5 + $0x630] sm:$0xff]  ;;  %v273_v8 = vld [vmem:[%s1204_s5 + $0x218] sm:$0xff] }
  0xb8   : > { %726 = vmatpush2.msra.mxu1 %v436_v35  ;;  %656 = vmatprep.subr.mxu0 %v305_v36  ;;  %v401_v9 = vld [vmem:[%s1204_s5 + $0x618] sm:$0xff]  ;;  %v272_v10 = vld [vmem:[%s1204_s5 + $0x210] sm:$0xff] }
  0xb9   : > { %727 = vmatprep.subr.mxu1 %v433_v37  ;;  %657 = vmatpush2.msra.mxu0 %v304_v38  ;;  %v400_v11 = vld [vmem:[%s1204_s5 + $0x610] sm:$0xff] }
  0xba   : > { %728 = vmatpush2.msra.mxu1 %v432_v39  ;;  %658 = vmatprep.subr.mxu0 %v301_v40 }
  0xbb   : > { %729 = vmatprep.subr.mxu1 %v429_v41  ;;  %659 = vmatpush2.msra.mxu0 %v300_v42 }
  0xbc   : > { %730 = vmatpush2.msra.mxu1 %v428_v43  ;;  %660 = vmatprep.subr.mxu0 %v297_v44 }
  0xbd   : > { %731 = vmatprep.subr.mxu1 %v425_v45  ;;  %661 = vmatpush2.msra.mxu0 %v296_v46 }
  0xbe   : > { %732 = vmatpush2.msra.mxu1 %v424_v47  ;;  %662 = vmatprep.subr.mxu0 %v293_v48 }
  0xbf   : > { %733 = vmatprep.subr.mxu1 %v421_v49  ;;  %663 = vmatpush2.msra.mxu0 %v292_v50 }
  0xc0   : > { %734 = vmatpush2.msra.mxu1 %v420_v51  ;;  %664 = vmatprep.subr.mxu0 %v289_v52 }
  0xc1   : > { %735 = vmatprep.subr.mxu1 %v417_v53  ;;  %665 = vmatpush2.msra.mxu0 %v288_v54 }
  0xc2   : > { %736 = vmatpush2.msra.mxu1 %v416_v55  ;;  %666 = vmatprep.subr.mxu0 %v285_v56 }
  0xc3   : > { %737 = vmatprep.subr.mxu1 %v413_v57  ;;  %667 = vmatpush2.msra.mxu0 %v284_v58 }
  0xc4   : > { %738 = vmatpush2.msra.mxu1 %v412_v59  ;;  %668 = vmatprep.subr.mxu0 %v281_v60 }
  0xc5   : > { %739 = vmatprep.subr.mxu1 %v409_v61  ;;  %669 = vmatpush2.msra.mxu0 %v280_v62 }
  0xc6   : > { %740 = vmatpush2.msra.mxu1 %v408_v0  ;;  %670 = vmatprep.subr.mxu0 %v277_v3 }
  0xc7   : > { %741 = vmatprep.subr.mxu1 %v405_v4  ;;  %671 = vmatpush2.msra.mxu0 %v276_v6 }
  0xc8   : > { %742 = vmatpush2.msra.mxu1 %v404_v7  ;;  %672 = vmatprep.subr.mxu0 %v273_v8 }
  0xc9   : > { %743 = vmatprep.subr.mxu1 %v401_v9  ;;  %673 = vmatpush2.msra.mxu0 %v272_v10 }
  0xca   : > { %674 = vmatprep.mubr.f32.mxu0 %v1341_v63  ;;  %744 = vmatpush2.msra.mxu1 %v400_v11 }
  0xcb   : > { %745 = vmatprep.mubr.f32.mxu1 %v1346_v2  ;;  %675 = vmatmul.mubr.f32.vlgmr.msra.gmra.mxu0 %v1344_v1 }
  0xcc   : > { %746 = vmatmul.mubr.f32.vlgmr.msra.gmra.mxu1 %v1351_v5  ;;  %929 = vset.pattern.permute.xlu0 %v1058_v13 }
  0xcd   : > { %465 = vperm.xlu0 %929, %v462_v12  }
 0x148   : > { %v466_v15 = vpop.permute.xlu0 %465 }
 0x149   : > { %v534_v14 = vpop.f32.mrf.mxu0 }
 0x14a   : > { %v535_v16 = vadd.f32 %v534_v14, %v466_v15 }
 0x14b   : > { %v605_v63 = vpop.f32.mrf.mxu1  ;;  %v536_v17 = vpop.f32.mrf.mxu0 }
 0x14c   : > { %v606_v18 = vadd.f32 %v605_v63, %v535_v16  ;;  %v537_v2 = vadd.f32 %v536_v17, %v466_v15 }
 0x14d   : > { %v607_v19 = vpop.f32.mrf.mxu1 }
 0x14e   : > { %752 = vst [vmem:[%s201_s11] sm:$0xff] %v606_v18  ;;  %v608_v20 = vadd.f32 %v607_v19, %v537_v2 }
 0x150   : > { %753 = vst [vmem:[%s201_s11 + $0x8] sm:$0xff] %v608_v20 }
 0x18b   : > { %v676_v1 = vpop.f32.mrf.mxu0 }
 0x18c   : > { %v747_v5 = vpop.f32.mrf.mxu1  ;;  %v677_v21 = vadd.f32 %v676_v1, %v466_v15 }
 0x18d   : > { %v678_v22 = vpop.f32.mrf.mxu0 }
 0x18e   : > { %v748_v23 = vadd.f32 %v747_v5, %v677_v21  ;;  %v679_v24 = vadd.f32 %v678_v22, %v466_v15  ;;  %v749_v25 = vpop.f32.mrf.mxu1 }
 0x190   : > { %754 = vst [vmem:[%s201_s11 + $0x10] sm:$0xff] %v748_v23  ;;  %v750_v26 = vadd.f32 %v749_v25, %v679_v24 }
 0x192   : > { %755 = vst [vmem:[%s201_s11 + $0x18] sm:$0xff] %v750_v26 }
 0x193   : > { %997 = shalt.err (!%p994_p0)
}
 0x194   : > { %s998_s19 = scalar_lea.hbm %s769_s30, 512  ;;  %s1002_s29 = scalar_lea.hbm %s1528_s3, 1024 }
 0x195   : > { %p999_p4 = scmp.ne.s32.totalorder %s769_s30, %s998_s19  ;;  %p1003_p6 = scmp.lt.s32.totalorder %s769_s30, %s1528_s3 }
 0x196   : > { %p1004_p13 = scmp.lt.s32.totalorder %s1002_s29, %s998_s19 }
 0x197   : > { %p1000_p11 = pnand %p999_p4, %p1545_p1 }
 0x198   : > { %p1005_p3 = por %p1004_p13, %p1003_p6 }
 0x199   : > { %p1001_p5 = pneg %p1000_p11 }
 0x19b   : > { %p1006_p12 = pnand %p1005_p3, %p1001_p5 }
 0x19d   : > { %1009 = shalt.err (!%p1006_p12)
}
 0x19e   : > { %875 = dma.vmem_to_hbm [thread:$0]  (%p1545_p1), %s772_s22, 512, %s769_s30, %s757_s8  }
 0x19f PF: > { %s783_s26 = sand.u32 1, %s1040_s12   ;;  %p1546_p7 = scmp.ne.s32.totalorder %s1536_s25, 0 }
 0x1a0   : > { %p1547_p8 = scmp.ge.s32.totalorder %s1052_s15, 2  ;;  %s784_s4 = scalar_lea.sflag [#allocation4], %s783_s26 }
 0x1a2   : > { %p886_p9 = pnand %p1547_p8, %p1546_p7 }
 0x1a4   : > { %p887_p10 = pneg %p886_p9 }
 0x1a6   : > { %1035 = dma.done.wait (%p887_p10), %s784_s4, 512  }
 0x1a7   : > { %1037 = vsyncadd (%p887_p10), %s784_s4, 4294966784  ;;  %p17_p2 = scmp.ge.s32.totalorder %s1105_s18, 4   ;;  %s1548_s12 = smov %s1044_s13 }
 0x1a8   : > { %s1549_s13 = smov %s1048_s14  ;;  %s1550_s14 = smov %s1117_s21 }
 0x1a9   : > { %s1551_s15 = smov %s1105_s18  ;;  %19 = sbr.rel (!%p17_p2) target bundleno = 6 (0x6), region = 81 }
 0x1ae   :  { %789 = vsyncpa [#allocation3], 1 }
 0x1af   :  { %791 = vsyncpa [#allocation3 + $0x1], 1 }
 0x1b0   :  { %792 = vsyncpa [#allocation6], 1 }
 0x1b1   :  { %793 = vsyncpa [#allocation4], 1 }
 0x1b2   :  { %795 = vsyncpa [#allocation4 + $0x1], 1 }

</bundles_post_ra>
